<compile_context>
chip_gen: v5e
topology: v5e:2x2
jax: 0.10.0
libtpu: 0.0.40
codegen_flags: <defaults>
</compile_context>

<pallas_src>
import jax
import jax.numpy as jnp
from jax.experimental import pallas as pl
from jax.experimental.pallas import tpu as pltpu

_LANES = 128
_SUBLANES = 8


def _round_up(x, m):
    return ((x + m - 1) // m) * m


def _mlp_kernel(x_ref, w1_ref, wh_ref, wo_ref, b_ref, o_ref):
    """Full 7-layer MLP forward: (X @ W + b), ReLU between layers 1..6.

    x_ref : (tb, n_features)        bf16
    w1_ref: (n_features, hidden)    bf16
    wh_ref: (n_hid*hidden, hidden)  bf16   (hidden->hidden layers stacked)
    wo_ref: (hidden, n_outs)        bf16
    b_ref : (8, 128)                f32    (row li = bias of layer li, zero-padded)
    o_ref : (tb, n_outs)            f32
    """
    hidden = w1_ref.shape[1]
    n_hid = wh_ref.shape[0] // hidden
    n_outs = wo_ref.shape[1]

    b_all = b_ref[...]  # one vreg, loaded once

    h = x_ref[...]  # bf16 (tb, n_features)

    # Layer 1
    z = jnp.dot(h, w1_ref[...], preferred_element_type=jnp.float32)
    z = z + b_all[0:1, 0:hidden]
    h = jnp.maximum(z, 0.0).astype(jnp.bfloat16)

    # Layers 2..6 (hidden -> hidden).  Static slices of the packed slab -> no
    # runtime cost, no extra DMAs.
    for li in range(n_hid):
        w = wh_ref[li * hidden:(li + 1) * hidden, :]
        z = jnp.dot(h, w, preferred_element_type=jnp.float32)
        z = z + b_all[li + 1:li + 2, 0:hidden]
        h = jnp.maximum(z, 0.0).astype(jnp.bfloat16)

    # Final layer: no ReLU, f32 output (only n_outs real lanes are stored).
    z = jnp.dot(h, wo_ref[...], preferred_element_type=jnp.float32)
    z = z + b_all[n_hid + 1:n_hid + 2, 0:n_outs]
    o_ref[...] = z.astype(o_ref.dtype)


def pack_params(params):
    """One-time (model-load) packing of per-layer (W, b) into kernel layout.

    params: list of 7 (W, b) pairs, W: (in, out) f32, b: (1, out) f32.
    Returns (w1, w_hid, w_out, b_all).
    NOTE: if bit-closeness to the f32 PyTorch module matters, keep weights f32
    here; bf16 is used for MXU-native throughput (error stays within ~5e-2).
    """
    n_layers = len(params)
    w1 = params[0][0].astype(jnp.bfloat16)                       # (n_features, hidden)
    hidden = w1.shape[1]
    assert hidden % _SUBLANES == 0, "hidden size must be a multiple of 8"
    w_hid = jnp.concatenate(
        [w.astype(jnp.bfloat16) for (w, _) in params[1:-1]], axis=0)  # (n_hid*hidden, hidden)
    w_out = params[-1][0].astype(jnp.bfloat16)                   # (hidden, n_outs)

    max_out = max(b.shape[-1] for (_, b) in params)
    rows = _round_up(n_layers, _SUBLANES)
    lanes = _round_up(max_out, _LANES)
    b_all = jnp.zeros((rows, lanes), jnp.float32)
    for li, (_, b) in enumerate(params):
        b_all = b_all.at[li, :b.shape[-1]].set(b.reshape(-1).astype(jnp.float32))
    return (w1, w_hid, w_out, b_all)


@jax.jit
def neural_net_forward(x, packed):
    """x: (batch, n_features) f32.  packed: output of pack_params()."""
    w1, w_hid, w_out, b_all = packed
    batch, n_features = x.shape
    n_outs = w_out.shape[1]

    # Batch tiling:
    #  * batch < 16 : single tile, no grid (inference fast path).
    #  * batch >= 16: >= 2 grid steps (both v7x TensorCores busy), tile capped
    #    at 256 rows (vreg-safe ceiling for the (tb, hidden) f32 accumulator).
    if batch >= 16:
        tb = min(_round_up(pl.cdiv(batch, 2), _SUBLANES), 256)
    else:
        tb = _round_up(batch, _SUBLANES)
    padded_batch = _round_up(batch, tb)
    num_steps = padded_batch // tb

    x_p = x
    if padded_batch != batch:
        x_p = jnp.pad(x, ((0, padded_batch - batch), (0, 0)))
    x_p = x_p.astype(jnp.bfloat16)

    out_shape = jax.ShapeDtypeStruct((padded_batch, n_outs), jnp.float32)

    if num_steps == 1:
        # No grid: everything resident in VMEM, zero pipeline bookkeeping.
        vmem = pl.BlockSpec(memory_space=pltpu.MemorySpace.VMEM)
        out = pl.pallas_call(
            _mlp_kernel,
            out_shape=out_shape,
            in_specs=[vmem, vmem, vmem, vmem, vmem],
            out_specs=vmem,
        )(x_p, w1, w_hid, w_out, b_all)
    else:
        out = pl.pallas_call(
            _mlp_kernel,
            out_shape=out_shape,
            grid=(num_steps,),
            in_specs=[
                pl.BlockSpec((tb, n_features), lambda i: (i, 0)),
                # Weight/bias slabs: full-extent blocks, resident across steps.
                pl.BlockSpec(w1.shape, lambda i: (0, 0)),
                pl.BlockSpec(w_hid.shape, lambda i: (0, 0)),
                pl.BlockSpec(w_out.shape, lambda i: (0, 0)),
                pl.BlockSpec(b_all.shape, lambda i: (0, 0)),
            ],
            out_specs=pl.BlockSpec((tb, n_outs), lambda i: (i, 0)),
            compiler_params=pltpu.CompilerParams(
                dimension_semantics=("parallel",)),
        )(x_p, w1, w_hid, w_out, b_all)

    return out[:batch, :]


def init_params(key, n_features, n_outs, hidden_size):
    """Deterministic init mimicking nn.Linear's U(-1/sqrt(fan_in), 1/sqrt(fan_in))."""
    dims = [n_features] + [hidden_size] * 6 + [n_outs]
    params = []
    for i in range(7):
        fan_in, fan_out = dims[i], dims[i + 1]
        key, kw, kb = jax.random.split(key, 3)
        bound = 1.0 / jnp.sqrt(fan_in)
        w = jax.random.uniform(kw, (fan_in, fan_out), jnp.float32, -bound, bound)
        b = jax.random.uniform(kb, (1, fan_out), jnp.float32, -bound, bound)
        params.append((w, b))
    return params


def reference_forward_f32(x, params):
    """Pure-f32 reference (matches the PyTorch module's numerics)."""
    h = x
    for i, (w, b) in enumerate(params):
        h = h @ w + b
        if i < 6:
            h = jnp.maximum(h, 0.0)
    return h


def reference_forward_bf16(x, params):
    """Reference matching the kernel's numerics: bf16 operands, f32 accumulation."""
    h = x.astype(jnp.bfloat16)
    for i, (w, b) in enumerate(params):
        z = jnp.dot(h, w.astype(jnp.bfloat16),
                    preferred_element_type=jnp.float32) + b
        if i < 6:
            h = jnp.maximum(z, 0.0).astype(jnp.bfloat16)
        else:
            h = z
    return h


if __name__ == "__main__":
    n_features = 16
    n_outs = 4
    hidden_size = 32

    key = jax.random.PRNGKey(0)
    key, kx, kx2 = jax.random.split(key, 3)
    params = init_params(key, n_features, n_outs, hidden_size)
    packed = pack_params(params)   # once, at "model load" time

    # Small-batch inference fast path (no grid).
    batch = 8
    x = jax.random.normal(kx, (batch, n_features), jnp.float32)
    out = jax.block_until_ready(neural_net_forward(x, packed))
    assert out.shape == (batch, n_outs), out.shape
    ref_bf16 = reference_forward_bf16(x, params)
    assert jnp.allclose(out, ref_bf16, atol=2e-3, rtol=2e-3), "mismatch vs bf16 reference"
    ref_f32 = reference_forward_f32(x, params)
    assert jnp.allclose(out, ref_f32, atol=5e-2, rtol=5e-2), "mismatch vs f32 reference"

    # Larger batch: exercises the gridded (parallel batch axis) path.
    batch2 = 32
    x2 = jax.random.normal(kx2, (batch2, n_features), jnp.float32)
    out2 = jax.block_until_ready(neural_net_forward(x2, packed))
    assert out2.shape == (batch2, n_outs), out2.shape
    ref2_bf16 = reference_forward_bf16(x2, params)
    assert jnp.allclose(out2, ref2_bf16, atol=2e-3, rtol=2e-3), "mismatch vs bf16 reference (grid)"
    ref2_f32 = reference_forward_f32(x2, params)
    assert jnp.allclose(out2, ref2_f32, atol=5e-2, rtol=5e-2), "mismatch vs f32 reference (grid)"

    print("KERNEL_OK")
</pallas_src>

<mosaic_0001>
module attributes {stable_mosaic.version = 11 : i64} {
  func.func @_mlp_kernel(%arg0: memref<8x16xbf16, #tpu.memory_space<vmem>>, %arg1: memref<16x32xbf16, #tpu.memory_space<vmem>>, %arg2: memref<160x32xbf16, #tpu.memory_space<vmem>>, %arg3: memref<32x4xbf16, #tpu.memory_space<vmem>>, %arg4: memref<8x128xf32, #tpu.memory_space<vmem>>, %arg5: memref<8x4xf32, #tpu.memory_space<vmem>>) attributes {dimension_semantics = [], scalar_prefetch = 0 : i64, scratch_operands = 0 : i64, tpu.core_type = #tpu.core_type<tc>} {
    %c0 = arith.constant 0 : index
    %c0_0 = arith.constant 0 : index
    %0 = vector.load %arg4[%c0, %c0_0] : memref<8x128xf32, #tpu.memory_space<vmem>>, vector<8x128xf32>
    %c0_1 = arith.constant 0 : index
    %c0_2 = arith.constant 0 : index
    %1 = vector.load %arg0[%c0_1, %c0_2] : memref<8x16xbf16, #tpu.memory_space<vmem>>, vector<8x16xbf16>
    %c0_3 = arith.constant 0 : index
    %c0_4 = arith.constant 0 : index
    %2 = vector.load %arg1[%c0_3, %c0_4] : memref<16x32xbf16, #tpu.memory_space<vmem>>, vector<16x32xbf16>
    %cst = arith.constant dense<0.000000e+00> : vector<8x32xf32>
    %3 = tpu.matmul %1, %2, %cst {dimension_numbers = #tpu.dot_dimension_numbers<[1], [0], [0], [1], [0, 0, 1, 1], [], []>} : vector<8x16xbf16>, vector<16x32xbf16>, vector<8x32xf32> -> vector<8x32xf32>
    %4 = vector.extract_strided_slice %0 {offsets = [0, 0], sizes = [1, 32], strides = [1, 1]} : vector<8x128xf32> to vector<1x32xf32>
    %5 = vector.broadcast %4 : vector<1x32xf32> to vector<8x32xf32>
    %6 = arith.addf %3, %5 : vector<8x32xf32>
    %cst_5 = arith.constant 0.000000e+00 : f32
    %7 = vector.broadcast %cst_5 : f32 to vector<8x32xf32>
    %8 = arith.maximumf %6, %7 : vector<8x32xf32>
    %9 = arith.truncf %8 : vector<8x32xf32> to vector<8x32xbf16>
    %c0_6 = arith.constant 0 : index
    %c0_7 = arith.constant 0 : index
    %10 = vector.load %arg2[%c0_6, %c0_7] : memref<160x32xbf16, #tpu.memory_space<vmem>>, vector<32x32xbf16>
    %cst_8 = arith.constant dense<0.000000e+00> : vector<8x32xf32>
    %11 = tpu.matmul %9, %10, %cst_8 {dimension_numbers = #tpu.dot_dimension_numbers<[1], [0], [0], [1], [0, 0, 1, 1], [], []>} : vector<8x32xbf16>, vector<32x32xbf16>, vector<8x32xf32> -> vector<8x32xf32>
    %12 = vector.extract_strided_slice %0 {offsets = [1, 0], sizes = [1, 32], strides = [1, 1]} : vector<8x128xf32> to vector<1x32xf32>
    %13 = vector.broadcast %12 : vector<1x32xf32> to vector<8x32xf32>
    %14 = arith.addf %11, %13 : vector<8x32xf32>
    %cst_9 = arith.constant 0.000000e+00 : f32
    %15 = vector.broadcast %cst_9 : f32 to vector<8x32xf32>
    %16 = arith.maximumf %14, %15 : vector<8x32xf32>
    %17 = arith.truncf %16 : vector<8x32xf32> to vector<8x32xbf16>
    %c32 = arith.constant 32 : index
    %c0_10 = arith.constant 0 : index
    %18 = vector.load %arg2[%c32, %c0_10] : memref<160x32xbf16, #tpu.memory_space<vmem>>, vector<32x32xbf16>
    %cst_11 = arith.constant dense<0.000000e+00> : vector<8x32xf32>
    %19 = tpu.matmul %17, %18, %cst_11 {dimension_numbers = #tpu.dot_dimension_numbers<[1], [0], [0], [1], [0, 0, 1, 1], [], []>} : vector<8x32xbf16>, vector<32x32xbf16>, vector<8x32xf32> -> vector<8x32xf32>
    %20 = vector.extract_strided_slice %0 {offsets = [2, 0], sizes = [1, 32], strides = [1, 1]} : vector<8x128xf32> to vector<1x32xf32>
    %21 = vector.broadcast %20 : vector<1x32xf32> to vector<8x32xf32>
    %22 = arith.addf %19, %21 : vector<8x32xf32>
    %cst_12 = arith.constant 0.000000e+00 : f32
    %23 = vector.broadcast %cst_12 : f32 to vector<8x32xf32>
    %24 = arith.maximumf %22, %23 : vector<8x32xf32>
    %25 = arith.truncf %24 : vector<8x32xf32> to vector<8x32xbf16>
    %c64 = arith.constant 64 : index
    %c0_13 = arith.constant 0 : index
    %26 = vector.load %arg2[%c64, %c0_13] : memref<160x32xbf16, #tpu.memory_space<vmem>>, vector<32x32xbf16>
    %cst_14 = arith.constant dense<0.000000e+00> : vector<8x32xf32>
    %27 = tpu.matmul %25, %26, %cst_14 {dimension_numbers = #tpu.dot_dimension_numbers<[1], [0], [0], [1], [0, 0, 1, 1], [], []>} : vector<8x32xbf16>, vector<32x32xbf16>, vector<8x32xf32> -> vector<8x32xf32>
    %28 = vector.extract_strided_slice %0 {offsets = [3, 0], sizes = [1, 32], strides = [1, 1]} : vector<8x128xf32> to vector<1x32xf32>
    %29 = vector.broadcast %28 : vector<1x32xf32> to vector<8x32xf32>
    %30 = arith.addf %27, %29 : vector<8x32xf32>
    %cst_15 = arith.constant 0.000000e+00 : f32
    %31 = vector.broadcast %cst_15 : f32 to vector<8x32xf32>
    %32 = arith.maximumf %30, %31 : vector<8x32xf32>
    %33 = arith.truncf %32 : vector<8x32xf32> to vector<8x32xbf16>
    %c96 = arith.constant 96 : index
    %c0_16 = arith.constant 0 : index
    %34 = vector.load %arg2[%c96, %c0_16] : memref<160x32xbf16, #tpu.memory_space<vmem>>, vector<32x32xbf16>
    %cst_17 = arith.constant dense<0.000000e+00> : vector<8x32xf32>
    %35 = tpu.matmul %33, %34, %cst_17 {dimension_numbers = #tpu.dot_dimension_numbers<[1], [0], [0], [1], [0, 0, 1, 1], [], []>} : vector<8x32xbf16>, vector<32x32xbf16>, vector<8x32xf32> -> vector<8x32xf32>
    %36 = vector.extract_strided_slice %0 {offsets = [4, 0], sizes = [1, 32], strides = [1, 1]} : vector<8x128xf32> to vector<1x32xf32>
    %37 = vector.broadcast %36 : vector<1x32xf32> to vector<8x32xf32>
    %38 = arith.addf %35, %37 : vector<8x32xf32>
    %cst_18 = arith.constant 0.000000e+00 : f32
    %39 = vector.broadcast %cst_18 : f32 to vector<8x32xf32>
    %40 = arith.maximumf %38, %39 : vector<8x32xf32>
    %41 = arith.truncf %40 : vector<8x32xf32> to vector<8x32xbf16>
    %c128 = arith.constant 128 : index
    %c0_19 = arith.constant 0 : index
    %42 = vector.load %arg2[%c128, %c0_19] : memref<160x32xbf16, #tpu.memory_space<vmem>>, vector<32x32xbf16>
    %cst_20 = arith.constant dense<0.000000e+00> : vector<8x32xf32>
    %43 = tpu.matmul %41, %42, %cst_20 {dimension_numbers = #tpu.dot_dimension_numbers<[1], [0], [0], [1], [0, 0, 1, 1], [], []>} : vector<8x32xbf16>, vector<32x32xbf16>, vector<8x32xf32> -> vector<8x32xf32>
    %44 = vector.extract_strided_slice %0 {offsets = [5, 0], sizes = [1, 32], strides = [1, 1]} : vector<8x128xf32> to vector<1x32xf32>
    %45 = vector.broadcast %44 : vector<1x32xf32> to vector<8x32xf32>
    %46 = arith.addf %43, %45 : vector<8x32xf32>
    %cst_21 = arith.constant 0.000000e+00 : f32
    %47 = vector.broadcast %cst_21 : f32 to vector<8x32xf32>
    %48 = arith.maximumf %46, %47 : vector<8x32xf32>
    %49 = arith.truncf %48 : vector<8x32xf32> to vector<8x32xbf16>
    %c0_22 = arith.constant 0 : index
    %c0_23 = arith.constant 0 : index
    %50 = vector.load %arg3[%c0_22, %c0_23] : memref<32x4xbf16, #tpu.memory_space<vmem>>, vector<32x4xbf16>
    %cst_24 = arith.constant dense<0.000000e+00> : vector<8x4xf32>
    %51 = tpu.matmul %49, %50, %cst_24 {dimension_numbers = #tpu.dot_dimension_numbers<[1], [0], [0], [1], [0, 0, 1, 1], [], []>} : vector<8x32xbf16>, vector<32x4xbf16>, vector<8x4xf32> -> vector<8x4xf32>
    %52 = vector.extract_strided_slice %0 {offsets = [6, 0], sizes = [1, 4], strides = [1, 1]} : vector<8x128xf32> to vector<1x4xf32>
    %53 = vector.broadcast %52 : vector<1x4xf32> to vector<8x4xf32>
    %54 = arith.addf %51, %53 : vector<8x4xf32>
    %c0_25 = arith.constant 0 : index
    %c0_26 = arith.constant 0 : index
    %55 = vector.load %arg5[%c0_25, %c0_26] : memref<8x4xf32, #tpu.memory_space<vmem>>, vector<8x4xf32>
    tpu.vector_store %arg5[%c0_25, %c0_26], %54 {strides = array<i32>} : memref<8x4xf32, #tpu.memory_space<vmem>>, vector<8x4xf32>,
    return
  }
}

</mosaic_0001>

<bundles_post_ra>
// kernel: neural_net_forward.1
= control target key start
LH: loop header
LB: loop body
LE: loop exit
PB: predicated region body
PF: predicated region fallthrough
CT: control target
= control target key end

     0   :  { %vm32_vm0 = vcmask 130048   ;;  %vm68_vm1 = vcmask 261120   ;;  %vm260_vm2 = vcmask 31744   ;;  %s431_s1 = inlined_call_operand.vmem [shape: bf16[16,32], index: 1, kind: input, shape index: {}]   ;;  %s432_s0 = inlined_call_operand.vmem [shape: bf16[8,16], index: 0, kind: input, shape index: {}]   ;;  %s433_s2 = inlined_call_operand.vmem [shape: bf16[160,32], index: 2, kind: input, shape index: {}]   ;;  %s434_s4 = inlined_call_operand.vmem [shape: f32[8,128], index: 4, kind: input, shape index: {}]   ;;  %s435_s3 = inlined_call_operand.vmem [shape: bf16[32,4], index: 3, kind: input, shape index: {}]   ;;  %s436_s5 = inlined_call_operand.vmem [shape: f32[8,4], index: 5, kind: output, shape index: {}]  }
   0x1   :  { %v325_v0 = vld [vmem:[%s431_s1] sm:$0xff]  ;;  %v327_v2 = vld [vmem:[%s433_s2 + $0x8] sm:$0xff]  ;;  %v329_v11 = vld [vmem:[%s433_s2 + $0x18] sm:$0xff] }
   0x2   :  { %43 = vmatpush.bf16.msra.mxu0 %v325_v0  ;;  %v22_v1 = vld [vmem:[%s432_s0] sm:$0xf]  ;;  %78 = vmatpush.bf16.msra.mxu1 %v327_v2  ;;  %v328_v12 = vld [vmem:[%s433_s2 + $0x10] sm:$0xff]  ;;  %v331_v19 = vld [vmem:[%s433_s2 + $0x28] sm:$0xff] }
   0x3   :  { %v326_v3 = vld [vmem:[%s433_s2] sm:$0xff]  ;;  %113 = vmatpush.bf16.msra.mxu2 %v329_v11  ;;  %148 = vmatpush.bf16.msra.mxu3 %v331_v19  ;;  %v333_v21 = vld [vmem:[%s433_s2 + $0x38] sm:$0xff]  ;;  %v332_v22 = vld [vmem:[%s433_s2 + $0x30] sm:$0xff] }
   0x4   :  { %v383_v4 = vld [vmem:[%s434_s4] sm:$0xff]  ;;  %v335_v29 = vld [vmem:[%s433_s2 + $0x48] sm:$0xff] }
   0x5   :  { %270 = vmatmul.msk.bf16.vlgmr.msra.gmra.mxu0 %vm32_vm0, %v22_v1  ;;  %v25_v5 = vperm.slane %v383_v4, 0  ;;  %v55_v13 = vperm.slane %v383_v4, 1  ;;  %v330_v20 = vld [vmem:[%s433_s2 + $0x20] sm:$0xff]  ;;  %v91_v23 = vperm.slane %v383_v4, 2  ;;  %v126_v31 = vperm.slane %v383_v4, 3  ;;  %v337_v37 = vld [vmem:[%s435_s3 + $0x8] sm:$0xff] }
   0x6   :  { %79 = vmatpush.bf16.msra.mxu1 %v326_v3  ;;  %183 = vmatpush.bf16.msrb.mxu0 %v333_v21  ;;  %v334_v30 = vld [vmem:[%s433_s2 + $0x40] sm:$0xff]  ;;  %v161_v39 = vperm.slane %v383_v4, 4  ;;  %v196_v45 = vperm.slane %v383_v4, 5  ;;  %v231_v51 = vperm.slane %v383_v4, 6 }
   0x7   :  { %114 = vmatpush.bf16.msra.mxu2 %v328_v12  ;;  %149 = vmatpush.bf16.msra.mxu3 %v330_v20  ;;  %v336_v38 = vld [vmem:[%s435_s3] sm:$0xff] }
   0xa   :  { %184 = vmatpush.bf16.msrb.mxu0 %v332_v22  ;;  %218 = vmatpush.bf16.msrb.mxu1 %v335_v29 }
   0xb   :  { %253 = vmatpush.bf16.msrb.mxu2 %v337_v37 }
   0xe   :  { %219 = vmatpush.bf16.msrb.mxu1 %v334_v30 }
   0xf   :  { %254 = vmatpush.bf16.msrb.mxu2 %v336_v38 }
  0x82   :  { %v45_v6 = vpop.f32.mrf.mxu0 }
  0x83   :  { %v46_v7 = vadd.f32 %v45_v6, %v25_v5 }
  0x85   :  { %v49_v8 = vmax.f32 %v46_v7, 0.0 }
  0x87   :  { %v50_v9 = vpack.c.bf16 %v49_v8, %v49_v8 }
  0x89   :  { %279 = vmatmul.msk.bf16.vlgmr.msra.gmra.mxu1 %vm68_vm1, %v50_v9 }
  0x8a   :  { %v47_v10 = vpop.f32.mrf.mxu0 }
 0x106   :  { %v81_v14 = vpop.f32.mrf.mxu1 }
 0x107   :  { %v82_v15 = vadd.f32 %v81_v14, %v55_v13 }
 0x109   :  { %v85_v16 = vmax.f32 %v82_v15, 0.0 }
 0x10b   :  { %v86_v17 = vpack.c.bf16 %v85_v16, %v85_v16 }
 0x10d   :  { %288 = vmatmul.msk.bf16.vlgmr.msra.gmra.mxu2 %vm68_vm1, %v86_v17 }
 0x10e   :  { %v83_v18 = vpop.f32.mrf.mxu1 }
 0x190   :  { %v116_v24 = vpop.f32.mrf.mxu2 }
 0x191   :  { %v117_v25 = vadd.f32 %v116_v24, %v91_v23 }
 0x193   :  { %v120_v26 = vmax.f32 %v117_v25, 0.0 }
 0x195   :  { %v121_v27 = vpack.c.bf16 %v120_v26, %v120_v26 }
 0x197   :  { %297 = vmatmul.msk.bf16.vlgmr.msra.gmra.mxu3 %vm68_vm1, %v121_v27 }
 0x198   :  { %v118_v28 = vpop.f32.mrf.mxu2 }
 0x21a   :  { %v151_v32 = vpop.f32.mrf.mxu3 }
 0x21b   :  { %v152_v33 = vadd.f32 %v151_v32, %v126_v31 }
 0x21d   :  { %v155_v34 = vmax.f32 %v152_v33, 0.0 }
 0x21f   :  { %v156_v35 = vpack.c.bf16 %v155_v34, %v155_v34 }
 0x221   :  { %306 = vmatmul.msk.bf16.vlgmr.msrb.gmra.mxu0 %vm68_vm1, %v156_v35 }
 0x222   :  { %v153_v36 = vpop.f32.mrf.mxu3 }
 0x29e   :  { %v186_v40 = vpop.f32.mrf.mxu0 }
 0x29f   :  { %v187_v41 = vadd.f32 %v186_v40, %v161_v39 }
 0x2a1   :  { %v190_v42 = vmax.f32 %v187_v41, 0.0 }
 0x2a3   :  { %v191_v43 = vpack.c.bf16 %v190_v42, %v190_v42 }
 0x2a5   :  { %315 = vmatmul.msk.bf16.vlgmr.msrb.gmra.mxu1 %vm68_vm1, %v191_v43 }
 0x2a6   :  { %v188_v44 = vpop.f32.mrf.mxu0 }
 0x322   :  { %v221_v46 = vpop.f32.mrf.mxu1 }
 0x323   :  { %v222_v47 = vadd.f32 %v221_v46, %v196_v45 }
 0x325   :  { %v225_v48 = vmax.f32 %v222_v47, 0.0 }
 0x327   :  { %v226_v49 = vpack.c.bf16 %v225_v48, %v225_v48 }
 0x329   :  { %324 = vmatmul.msk.bf16.vlgmr.msrb.gmra.mxu2 %vm68_vm1, %v226_v49 }
 0x32a   :  { %v223_v50 = vpop.f32.mrf.mxu1 }
 0x3ac   :  { %v256_v52 = vpop.f32.mrf.mxu2 }
 0x3ad   :  { %v257_v53 = vadd.f32 %v256_v52, %v231_v51 }
 0x3af   :  { %261 = vst.msk [vmem:[%s436_s5] sm:$0xff] %vm260_vm2, %v257_v53 }
 0x3b4   :  { %v258_v54 = vpop.f32.mrf.mxu2 }

</bundles_post_ra>
